<compile_context>
chip_gen: v5e
topology: v5e:2x2
jax: 0.10.0
libtpu: 0.0.40
codegen_flags: <defaults>
</compile_context>

<pallas_src>
import numpy as np
import jax
import jax.numpy as jnp
from jax.experimental import pallas as pl
from jax.experimental.pallas import tpu as pltpu


def _round_up(x, m):
    return ((x + m - 1) // m) * m


# ----------------------------------------------------------------------------
# Host-side (float64) buffer construction — mirrors estimateTransformation.__init__
# ----------------------------------------------------------------------------
def _build_C(F):
    # reference hard-codes a 31x31 grid
    im_x, im_y = np.mgrid[-1:1:complex(31), -1:1:complex(31)]
    C = np.stack((im_y, im_x), axis=2).reshape(-1, 2)
    return C


def _build_inv_delta_C(F, C):
    diff = C[:, None, :] - C[None, :, :]
    hat_C = np.sqrt(np.sum(diff * diff, axis=2))
    np.fill_diagonal(hat_C, 1)
    hat_C = hat_C ** 2 * np.log(hat_C ** 2)
    delta_C = np.concatenate(
        [
            np.concatenate([np.ones((F, 1)), C, hat_C], axis=1),
            np.concatenate([np.zeros((1, 3)), np.ones((1, F))], axis=1),
            np.concatenate([np.zeros((2, 3)), np.transpose(C)], axis=1),
        ],
        axis=0,
    )
    return np.linalg.inv(delta_C)


def _build_P(I_r_width, I_r_height):
    I_r_grid_x = (np.arange(-I_r_width, I_r_width, 2) + 1.0) / I_r_width
    I_r_grid_y = (np.arange(-I_r_height, I_r_height, 2) + 1.0) / I_r_height
    P = np.stack(np.meshgrid(I_r_grid_x, I_r_grid_y), axis=2)
    return P.reshape([-1, 2])


def _build_P_hat(F, C, P, eps=1e-6):
    n = P.shape[0]
    P_tile = np.tile(np.expand_dims(P, axis=1), (1, F, 1))
    C_tile = np.expand_dims(C, axis=0)
    P_diff = P_tile - C_tile
    rbf_norm = np.linalg.norm(P_diff.astype(np.float32), ord=2, axis=2)
    rbf = 2 * np.multiply(np.square(rbf_norm), np.log(rbf_norm + eps))
    P_hat = np.concatenate([np.ones((n, 1)), P, rbf], axis=1)
    return P_hat


def _pick_tile_n(B, C, H_in, W_in, n_out):
    """Output-pixel tile width: multiple of 128, per-column working set ~16 MiB."""
    n128 = _round_up(n_out, 128)
    # per output-column bytes for wx/wy/tmp/out (+ slack), f32
    per_col_bytes = 4 * (2 * C * W_in + 3 * (H_in + W_in) + 6 * C + 16)
    budget_cols = max(128, ((16 * 1024 * 1024) // per_col_bytes // 128) * 128)
    tile = max(128, min(4096, n128, budget_cols))
    # keep >= 2 total grid steps when B == 1 so both v7x TensorCores get work
    if B == 1 and n128 > 128:
        tile = min(tile, _round_up(max(n128 // 2, 128), 128))
    return tile


# ----------------------------------------------------------------------------
# Fused Pallas kernel: bilinear grid_sample(border, align_corners=True) with a
# separable tent-weight contraction.
# ----------------------------------------------------------------------------
def _make_kernel(C, H_in, W_in, W_pad, tile_n):
    w_max = float(W_in - 1)
    h_max = float(H_in - 1)

    def kernel(pp_ref, img_ref, out_ref):
        # ---- TPS sampling grid for this tile (precomputed in XLA) ----
        pp = pp_ref[0]                                     # (2, tile_n)
        gx = pp[0:1, :]                                    # x (width coord)
        gy = pp[1:2, :]                                    # y (height coord)

        # un-normalize + clamp == padding_mode='border', align_corners=True
        ix = jnp.clip((gx + 1.0) * (0.5 * w_max), 0.0, w_max)   # (1, tile_n)
        iy = jnp.clip((gy + 1.0) * (0.5 * h_max), 0.0, h_max)   # (1, tile_n)

        # separable tent weights (bilinear)
        xq = jax.lax.broadcasted_iota(jnp.int32, (W_pad, tile_n), 0).astype(jnp.float32)
        yq = jax.lax.broadcasted_iota(jnp.int32, (H_in, tile_n), 0).astype(jnp.float32)
        wx = jnp.maximum(1.0 - jnp.abs(xq - ix), 0.0)            # (W_pad, tile_n)
        wy = jnp.maximum(1.0 - jnp.abs(yq - iy), 0.0)            # (H_in,  tile_n)

        # stage 1: MXU matmul with M = C*W_pad rows
        img_t = img_ref[0]                                       # (C*W_pad, H_in)
        tmp = jnp.dot(img_t, wy, preferred_element_type=jnp.float32)  # (C*W_pad, tile_n)

        # stage 2: multiply by wx (broadcast over C) and reduce over W
        tmp = tmp.reshape(C, W_pad, tile_n) * wx[None, :, :]
        out_ref[0] = jnp.sum(tmp, axis=1)                        # (C, tile_n)

    return kernel


class ThinPlateSplineShapeTransformer:
    """JAX/Pallas port of createThinPlateSplineShapeTransformer (shap_new=None path)."""

    def __init__(self, I_r_size, fiducial_num=(31, 31)):
        self.f_row_num, self.f_col_num = fiducial_num
        self.F = self.f_row_num * self.f_col_num
        self.I_r_size = I_r_size  # (H_r, W_r)

        self.C = _build_C(self.F)                                  # (F, 2)
        self.P = _build_P(I_r_size[1], I_r_size[0])                # (n_out, 2)
        inv_delta_C = _build_inv_delta_C(self.F, self.C)           # (F+3, F+3) f64
        P_hat = _build_P_hat(self.F, self.C, self.P)               # (n_out, F+3) f64

        # A = (P_hat @ inv_delta_C)^T, folded once in float64.
        self._A64 = inv_delta_C.T @ P_hat.T                        # (F+3, n_out) f64
        self.n_out = self.P.shape[0]
        self._A_cache = {}                                         # padded f32 variants

    def _padded_A(self, n_out_pad):
        if n_out_pad not in self._A_cache:
            F3 = self.F + 3
            A = np.zeros((F3, n_out_pad), dtype=np.float32)
            A[:, : self.n_out] = self._A64.astype(np.float32)
            self._A_cache[n_out_pad] = jnp.asarray(A)
        return self._A_cache[n_out_pad]

    def build_P_prime_T(self, batch_F, n_out_pad):
        """TPS grid P'^T of shape (B, 2, n_out_pad) — plain XLA, hoisted out of the kernel."""
        B = batch_F.shape[0]
        cpz = jnp.concatenate(
            [batch_F.astype(jnp.float32), jnp.zeros((B, 3, 2), jnp.float32)], axis=1
        )                                                          # (B, F+3, 2)
        A = self._padded_A(n_out_pad)                              # (F+3, n_out_pad)
        return jnp.einsum("bfi,fn->bin", cpz, A,
                          precision=jax.lax.Precision.HIGHEST)     # (B, 2, n_out_pad)

    def __call__(self, batch_I, batch_F):
        B, C, H_in, W_in = batch_I.shape
        H_r, W_r = self.I_r_size
        n_out = self.n_out

        tile_n = _pick_tile_n(B, C, H_in, W_in, n_out)
        n_out_pad = _round_up(n_out, tile_n)
        n_tiles = n_out_pad // tile_n

        # TPS sampling grid, hoisted matmul (XLA).
        pp = self.build_P_prime_T(batch_F, n_out_pad)              # (B, 2, n_out_pad)

        # Image pre-transposed to (B, C*W_pad, H_in) so stage-1 matmul has
        # M = C*W_pad rows; W padded to a multiple of 8 so the in-kernel
        # sublane split (C*W_pad) -> (C, W_pad) is tile-aligned.  The padded
        # rows are zero and always get zero bilinear weight (ix <= W_in-1).
        W_pad = _round_up(W_in, 8)
        img_t = jnp.transpose(batch_I.astype(jnp.float32), (0, 1, 3, 2))  # (B, C, W, H)
        if W_pad != W_in:
            img_t = jnp.pad(img_t, ((0, 0), (0, 0), (0, W_pad - W_in), (0, 0)))
        img_t = img_t.reshape(B, C * W_pad, H_in)

        # VMEM budget from the (slab-free) working set; safe under v7x's 64 MiB.
        vmem_need = (
            2 * (2 * tile_n) * 4                       # pp tile, double-buffered
            + 2 * (C * tile_n) * 4                     # output tile
            + 2 * (C * W_pad * H_in) * 4               # transposed image
            + 2 * tile_n * 4 * (C * W_pad + 2 * (H_in + W_pad) + 2 * C)  # temporaries
        )
        vmem_limit = int(min(max(vmem_need + (4 << 20), 16 << 20), 40 << 20))

        kernel = _make_kernel(C, H_in, W_in, W_pad, tile_n)
        out_flat = pl.pallas_call(
            kernel,
            out_shape=jax.ShapeDtypeStruct((B, C, n_out_pad), jnp.float32),
            grid=(B, n_tiles),
            in_specs=[
                pl.BlockSpec((1, 2, tile_n), lambda b, j: (b, 0, j)),        # grid tile
                pl.BlockSpec((1, C * W_pad, H_in), lambda b, j: (b, 0, 0)),  # image (per batch)
            ],
            out_specs=pl.BlockSpec((1, C, tile_n), lambda b, j: (b, 0, j)),
            compiler_params=pltpu.CompilerParams(
                dimension_semantics=("parallel", "parallel"),
                vmem_limit_bytes=vmem_limit,
            ),
        )(pp, img_t)

        return out_flat[:, :, :n_out].reshape(B, C, H_r, W_r)

    # TODO(synk): the `shap_new is not None` branch (F.interpolate of the grid
    # before sampling) is not implemented; only the default forward path is.


# ----------------------------------------------------------------------------
# Pure-JAX reference (grid_sample, border, align_corners=True) for a sanity check.
# ----------------------------------------------------------------------------
def _grid_sample_ref(img, pp, H_r, W_r):
    B, C, H, W = img.shape
    gx = pp[:, 0, :]
    gy = pp[:, 1, :]
    ix = jnp.clip((gx + 1.0) * 0.5 * (W - 1), 0.0, W - 1)
    iy = jnp.clip((gy + 1.0) * 0.5 * (H - 1), 0.0, H - 1)
    x0 = jnp.floor(ix)
    y0 = jnp.floor(iy)
    x1 = jnp.clip(x0 + 1.0, 0.0, W - 1)
    y1 = jnp.clip(y0 + 1.0, 0.0, H - 1)
    wx1 = ix - x0
    wx0 = 1.0 - wx1
    wy1 = iy - y0
    wy0 = 1.0 - wy1
    x0i, x1i = x0.astype(jnp.int32), x1.astype(jnp.int32)
    y0i, y1i = y0.astype(jnp.int32), y1.astype(jnp.int32)
    flat = img.reshape(B, C, H * W)
    n = pp.shape[-1]

    def gather(yi, xi):
        idx = jnp.broadcast_to((yi * W + xi)[:, None, :], (B, C, n))
        return jnp.take_along_axis(flat, idx, axis=2)

    out = (gather(y0i, x0i) * (wy0 * wx0)[:, None, :]
           + gather(y0i, x1i) * (wy0 * wx1)[:, None, :]
           + gather(y1i, x0i) * (wy1 * wx0)[:, None, :]
           + gather(y1i, x1i) * (wy1 * wx1)[:, None, :])
    return out.reshape(B, C, H_r, W_r)


if __name__ == "__main__":
    B, Cc, H_in, W_in = 2, 4, 16, 16
    I_r_size = (16, 16)  # (H_r, W_r) of the rectified image

    tps = ThinPlateSplineShapeTransformer(I_r_size, fiducial_num=(31, 31))

    key = jax.random.PRNGKey(0)
    k_img, k_pts = jax.random.split(key)
    batch_I = jax.random.normal(k_img, (B, Cc, H_in, W_in), dtype=jnp.float32)
    # fiducial control points: the canonical 31x31 grid plus a small perturbation
    base_C = jnp.asarray(tps.C, dtype=jnp.float32)                   # (961, 2)
    batch_F = jnp.clip(
        base_C[None, :, :]
        + 0.05 * jax.random.normal(k_pts, (B, tps.F, 2), dtype=jnp.float32),
        -1.0,
        1.0,
    )

    out = tps(batch_I, batch_F)
    jax.block_until_ready(out)
    assert out.shape == (B, Cc, I_r_size[0], I_r_size[1]), out.shape

    # sanity check against a pure-JAX bilinear sampler on the same TPS grid
    n_out_pad = _round_up(tps.n_out, _pick_tile_n(B, Cc, H_in, W_in, tps.n_out))
    pp_full = tps.build_P_prime_T(batch_F, n_out_pad)[:, :, : tps.n_out]
    ref = _grid_sample_ref(batch_I, pp_full, *I_r_size)
    max_err = float(jnp.max(jnp.abs(out - ref)))
    assert max_err < 3e-2, f"max abs error vs reference: {max_err}"

    print("KERNEL_OK")
</pallas_src>

<mosaic_0001>
module attributes {stable_mosaic.version = 11 : i64} {
  func.func @kernel(%arg0: i32, %arg1: i32, %arg2: memref<1x2x256xf32, #tpu.memory_space<vmem>>, %arg3: memref<1x64x16xf32, #tpu.memory_space<vmem>>, %arg4: memref<1x4x256xf32, #tpu.memory_space<vmem>>) attributes {dimension_semantics = [#tpu.dimension_semantics<parallel>, #tpu.dimension_semantics<parallel>], iteration_bounds = array<i64: 2, 1>, scalar_prefetch = 0 : i64, scratch_operands = 0 : i64, tpu.core_type = #tpu.core_type<tc>, window_params = [{transform_indices = @transform_0, window_bounds = array<i64: 1, 2, 256>}, {transform_indices = @transform_1, window_bounds = array<i64: 1, 64, 16>}, {transform_indices = @transform_2, window_bounds = array<i64: 1, 4, 256>}]} {
    %c0 = arith.constant 0 : index
    %c0_0 = arith.constant 0 : index
    %c0_1 = arith.constant 0 : index
    %0 = vector.load %arg2[%c0, %c0_0, %c0_1] : memref<1x2x256xf32, #tpu.memory_space<vmem>>, vector<1x2x256xf32>
    %1 = vector.shape_cast %0 : vector<1x2x256xf32> to vector<2x256xf32>
    %2 = vector.extract_strided_slice %1 {offsets = [0, 0], sizes = [1, 256], strides = [1, 1]} : vector<2x256xf32> to vector<1x256xf32>
    %3 = vector.extract_strided_slice %1 {offsets = [1, 0], sizes = [1, 256], strides = [1, 1]} : vector<2x256xf32> to vector<1x256xf32>
    %cst = arith.constant 1.000000e+00 : f32
    %4 = vector.broadcast %cst : f32 to vector<1x256xf32>
    %5 = arith.addf %2, %4 : vector<1x256xf32>
    %cst_2 = arith.constant 7.500000e+00 : f32
    %6 = vector.broadcast %cst_2 : f32 to vector<1x256xf32>
    %7 = arith.mulf %5, %6 : vector<1x256xf32>
    %cst_3 = arith.constant 0.000000e+00 : f32
    %cst_4 = arith.constant 1.500000e+01 : f32
    %8 = vector.broadcast %cst_3 : f32 to vector<1x256xf32>
    %9 = arith.maximumf %8, %7 : vector<1x256xf32>
    %10 = vector.broadcast %cst_4 : f32 to vector<1x256xf32>
    %11 = arith.minimumf %10, %9 : vector<1x256xf32>
    %cst_5 = arith.constant 1.000000e+00 : f32
    %12 = vector.broadcast %cst_5 : f32 to vector<1x256xf32>
    %13 = arith.addf %3, %12 : vector<1x256xf32>
    %cst_6 = arith.constant 7.500000e+00 : f32
    %14 = vector.broadcast %cst_6 : f32 to vector<1x256xf32>
    %15 = arith.mulf %13, %14 : vector<1x256xf32>
    %cst_7 = arith.constant 0.000000e+00 : f32
    %cst_8 = arith.constant 1.500000e+01 : f32
    %16 = vector.broadcast %cst_7 : f32 to vector<1x256xf32>
    %17 = arith.maximumf %16, %15 : vector<1x256xf32>
    %18 = vector.broadcast %cst_8 : f32 to vector<1x256xf32>
    %19 = arith.minimumf %18, %17 : vector<1x256xf32>
    %20 = tpu.iota {dimensions = array<i32: 0>} : vector<16x256xi32>
    %21 = arith.sitofp %20 : vector<16x256xi32> to vector<16x256xf32>
    %22 = tpu.iota {dimensions = array<i32: 0>} : vector<16x256xi32>
    %23 = arith.sitofp %22 : vector<16x256xi32> to vector<16x256xf32>
    %24 = vector.broadcast %11 : vector<1x256xf32> to vector<16x256xf32>
    %25 = arith.subf %21, %24 : vector<16x256xf32>
    %26 = math.absf %25 : vector<16x256xf32>
    %cst_9 = arith.constant 1.000000e+00 : f32
    %27 = vector.broadcast %cst_9 : f32 to vector<16x256xf32>
    %28 = arith.subf %27, %26 : vector<16x256xf32>
    %cst_10 = arith.constant 0.000000e+00 : f32
    %29 = vector.broadcast %cst_10 : f32 to vector<16x256xf32>
    %30 = arith.maximumf %28, %29 : vector<16x256xf32>
    %31 = vector.broadcast %19 : vector<1x256xf32> to vector<16x256xf32>
    %32 = arith.subf %23, %31 : vector<16x256xf32>
    %33 = math.absf %32 : vector<16x256xf32>
    %cst_11 = arith.constant 1.000000e+00 : f32
    %34 = vector.broadcast %cst_11 : f32 to vector<16x256xf32>
    %35 = arith.subf %34, %33 : vector<16x256xf32>
    %cst_12 = arith.constant 0.000000e+00 : f32
    %36 = vector.broadcast %cst_12 : f32 to vector<16x256xf32>
    %37 = arith.maximumf %35, %36 : vector<16x256xf32>
    %c0_13 = arith.constant 0 : index
    %c0_14 = arith.constant 0 : index
    %c0_15 = arith.constant 0 : index
    %38 = vector.load %arg3[%c0_13, %c0_14, %c0_15] : memref<1x64x16xf32, #tpu.memory_space<vmem>>, vector<1x64x16xf32>
    %39 = vector.shape_cast %38 : vector<1x64x16xf32> to vector<64x16xf32>
    %cst_16 = arith.constant dense<0.000000e+00> : vector<64x256xf32>
    %40 = tpu.matmul %39, %37, %cst_16 {dimension_numbers = #tpu.dot_dimension_numbers<[1], [0], [0], [1], [0, 0, 1, 1], [], []>} : vector<64x16xf32>, vector<16x256xf32>, vector<64x256xf32> -> vector<64x256xf32>
    %41 = vector.shape_cast %40 : vector<64x256xf32> to vector<4x16x256xf32>
    %42 = vector.shape_cast %30 : vector<16x256xf32> to vector<1x16x256xf32>
    %43 = vector.broadcast %42 : vector<1x16x256xf32> to vector<4x16x256xf32>
    %44 = arith.mulf %41, %43 : vector<4x16x256xf32>
    %cst_17 = arith.constant dense<0.000000e+00> : vector<4x256xf32>
    %45 = vector.multi_reduction <add>, %44, %cst_17 [1] : vector<4x16x256xf32> to vector<4x256xf32>
    %c0_18 = arith.constant 0 : index
    %c0_19 = arith.constant 0 : index
    %c0_20 = arith.constant 0 : index
    %46 = vector.load %arg4[%c0_18, %c0_19, %c0_20] : memref<1x4x256xf32, #tpu.memory_space<vmem>>, vector<1x4x256xf32>
    %47 = vector.shape_cast %46 : vector<1x4x256xf32> to vector<4x256xf32>
    %48 = vector.shape_cast %45 : vector<4x256xf32> to vector<1x4x256xf32>
    tpu.vector_store %arg4[%c0_18, %c0_19, %c0_20], %48 {strides = array<i32>} : memref<1x4x256xf32, #tpu.memory_space<vmem>>, vector<1x4x256xf32>,
    return
  }
  func.func @transform_0(%arg0: i32, %arg1: i32) -> (i32, i32, i32) {
    %c0_i32 = arith.constant 0 : i32
    %c0_i32_0 = arith.constant 0 : i32
    return %arg0, %c0_i32, %arg1 : i32, i32, i32
  }
  func.func @transform_1(%arg0: i32, %arg1: i32) -> (i32, i32, i32) {
    %c0_i32 = arith.constant 0 : i32
    %c0_i32_0 = arith.constant 0 : i32
    %c0_i32_1 = arith.constant 0 : i32
    return %arg0, %c0_i32, %c0_i32_0 : i32, i32, i32
  }
  func.func @transform_2(%arg0: i32, %arg1: i32) -> (i32, i32, i32) {
    %c0_i32 = arith.constant 0 : i32
    %c0_i32_0 = arith.constant 0 : i32
    return %arg0, %c0_i32, %arg1 : i32, i32, i32
  }
}

</mosaic_0001>

<bundles_post_ra>
// kernel: tpu_custom_call.1
= control target key start
LH: loop header
LB: loop body
LE: loop exit
PB: predicated region body
PF: predicated region fallthrough
CT: control target
= control target key end

     0   :  { %7 = vsyncpa [#allocation3], 0  ;;  %s913_s0 = inlined_call_operand.vmem [shape: f32[2,2,256], index: 0, kind: input, shape index: {}]   ;;  %s914_s1 = inlined_call_operand.vmem [shape: f32[2,64,16], index: 1, kind: input, shape index: {}]   ;;  %s915_s2 = inlined_call_operand.hbm [shape: f32[2,4,256], index: 2, kind: output, shape index: {}]  }
   0x1   :  { %9 = vsyncpa [#allocation3 + $0x1], 0  ;;  %s764_s9 = smov 0   ;;  %s766_s10 = smov 0  }
   0x2   :  { %s768_s11 = smov 0   ;;  %s770_s12 = smov 0  }
   0x3   :  { %s772_s13 = smov 0   ;;  %s774_s14 = smov 0  }
   0x4 LB: > { %s576_s15 = sadd.s32 4294967295, %s747_s14   ;;  %s577_s16 = sadd.s32 4294967294, %s747_s14   ;;  %s747_s14 = sphi %s774_s14, %s15_s14   ;;  %s743_s13 = sphi %s772_s13, %s922_s13   ;;  %s739_s12 = sphi %s770_s12, %s921_s12   ;;  %s735_s11 = sphi %s768_s11, %s920_s11   ;;  %s731_s10 = sphi %s766_s10, %s919_s10   ;;  %s727_s9 = sphi %s764_s9, %s918_s9  }
   0x5   : > { %s27_s17 = sadd.s32 1, %s743_s13  ;;  %s90_s18 = sadd.s32 1, %s735_s11 }
   0x6   : > { %p29_p0 = scmp.ge.s32.totalorder %s27_s17, 2  ;;  %p100_p1 = scmp.ne.s32.totalorder %s735_s11, %s731_s10 }
   0x7   : > { %p101_p2 = scmp.eq.s32.totalorder %s576_s15, 1  ;;  %p106_p3 = scmp.ne.s32.totalorder %s731_s10, %s727_s9 }
   0x8   : > { %s924_s17 = smov (%p29_p0, %s27_s17), 0  ;;  %p107_p5 = scmp.eq.s32.totalorder %s577_s16, 1 }
   0x9   : > { %p804_p4 = por %p101_p2, %p100_p1  ;;  %s85_s20 = ssub.s32 %s743_s13, %s924_s17 }
   0xa   : > { %p580_p6 = scmp.ge.s32.totalorder %s747_s14, 1  ;;  %p88_p7 = scmp.eq.s32.totalorder %s85_s20, 0 }
   0xb   : > { %p811_p8 = por %p107_p5, %p106_p3  ;;  %p146_p9 = scmp.lt.s32.totalorder %s747_s14, 3 }
   0xc   : > { %s817_s22 = scalar_select %p88_p7, %s735_s11, %s90_s18  }
   0xd   : > { %p147_p10 = pnand %p580_p6, %p146_p9 }
   0xe   : > { %p178_p11 = scmp.lt.s32.totalorder (!%p147_p10), %s739_s12, 1  ;;  %s174_s4 = sand.u32 (!%p147_p10), 1, %s731_s10  }
   0xf   : > { %150 = sbr.rel (%p147_p10) target bundleno = 232 (0xe8), region = 28  ;;  %s868_s5 = sshll.u32 (!%p147_p10), %s174_s4, 3 }
  0x10   : > { %s609_s6 = sshll.u32 (!%p147_p10), %s739_s12, 3  ;;  %s470_s20 = scalar_lea.sflag (!%p147_p10), [#allocation3], %s174_s4 }
  0x11   : > { %s483_s15 = scalar_lea.hbm (!%p147_p10), %s915_s2, %s609_s6 }
  0x12   : > { %s487_s18 = sshll.u32 (!%p147_p10), %s483_s15, 4  ;;  %s488_s18 = int_to_ptr.hbm [resolvable:$true] %s487_s18 }
  0x14   : > { %s821_s23 = scalar_select %p178_p11, %s739_s12, 1  ;;  %v198_v0 = vlaneseq  ;;  %vm256_vm0 = vcmask 130048   ;;  %vm447_vm1 = vcmask 1043456   ;;  %vm453_vm2 = vcmask 1041409  }
  0x15   : > { %vm455_vm3 = vcmask 1045509   ;;  %vm458_vm4 = vcmask 1042434   ;;  %vm460_vm5 = vcmask 1046534   ;;  %vm463_vm6 = vcmask 1043459   ;;  %s176_s12 = scalar_lea.vmem [#allocation2], %s868_s5 }
  0x16   : > { %s607_s24 = sshll.u32 %s821_s23, 2  ;;  %v199_v3 = vshrl.u32 %v198_v0, 7  ;;  %s608_s28 = sshll.u32 %s821_s23, 6  ;;  %vm465_vm7 = vcmask 1047559  }
  0x17   : > { %s185_s27 = scalar_lea.vmem %s913_s0, %s607_s24  ;;  %s191_s3 = scalar_lea.vmem %s914_s1, %s608_s28 }
  0x18   : > { %v193_v1 = vld [vmem:[%s185_s27] sm:$0xf]  ;;  %v200_v6 = vadd.s32 8, %v199_v3  ;;  %v833_v11 = vcvt.s32.f32 %v199_v3  ;;  %v249_v32 = vld [vmem:[%s191_s3 + $0x8] sm:$0xff]  ;;  %v250_v34 = vld [vmem:[%s191_s3 + $0x10] sm:$0xff]  ;;  %s485_s16 = sshll.u32 %s176_s12, 4  ;;  %s486_s16 = int_to_ptr.vmem [resolvable:$true] %s485_s16 }
  0x19   : > { %v194_v2 = vadd.f32 1.0, %v193_v1  ;;  %v248_v30 = vld [vmem:[%s191_s3] sm:$0xff]  ;;  %v253_v33 = vld [vmem:[%s191_s3 + $0x28] sm:$0xff]  ;;  %v254_v35 = vld [vmem:[%s191_s3 + $0x30] sm:$0xff]  ;;  %s683_s23 = sshra.s32 %s488_s18, 4  ;;  %s689_s27 = scalar_lea.hbm %s915_s2, 16  ;;  %s684_s23 = int_to_ptr.hbm [resolvable:$true] %s683_s23 }
  0x1a   : > { %v829_v8 = vcvt.s32.f32 %v200_v6  ;;  %v252_v31 = vld [vmem:[%s191_s3 + $0x20] sm:$0xff]  ;;  %v251_v36 = vld [vmem:[%s191_s3 + $0x18] sm:$0xff]  ;;  %s685_s24 = scalar_lea.hbm %s684_s23, 8  ;;  %p690_p1 = scmp.lt.s32.totalorder %s684_s23, %s915_s2 }
  0x1b   : > { %v195_v4 = vmul.f32 7.5, %v194_v2  ;;  %v255_v37 = vld [vmem:[%s191_s3 + $0x38] sm:$0xff]  ;;  %p686_p12 = scmp.ne.s32.totalorder %s684_s23, %s685_s24  ;;  %p691_p2 = scmp.lt.s32.totalorder %s689_s27, %s685_s24 }
  0x1d   : > { %v196_v5 = vmax.f32 %v195_v4, 0.0  ;;  %p687_p13 = pnand %p686_p12, %p804_p4  ;;  %p692_p3 = por %p691_p2, %p690_p1 }
  0x1f   : > { %v827_v7 = vmin.f32 %v196_v5, 15.0  ;;  %p688_p0 = pneg %p687_p13 }
  0x21   : > { %v226_v9 = vperm.slane %v827_v7, 1  ;;  %v227_v10 = vperm.slane %v827_v7, 3  ;;  %v205_v38 = vperm.slane %v827_v7, 2  ;;  %v204_v40 = vperm.slane %v827_v7, 0  ;;  %p693_p5 = pnand %p692_p3, %p688_p0 }
  0x23   : > { %v230_v12 = vperm.slane %v226_v9, 1  ;;  %v231_v13 = vperm.slane %v227_v10, 1  ;;  %v209_v39 = vperm.slane %v205_v38, 0  ;;  %v208_v43 = vperm.slane %v204_v40, 0 }
  0x25   : > { %v234_v14 = vsub.f32 %v829_v8, %v230_v12  ;;  %v235_v15 = vsub.f32 %v829_v8, %v231_v13  ;;  %v232_v16 = vsub.f32 %v833_v11, %v230_v12  ;;  %v233_v17 = vsub.f32 %v833_v11, %v231_v13 }
  0x26   : > { %v213_v41 = vsub.f32 %v829_v8, %v209_v39  ;;  %v211_v42 = vsub.f32 %v833_v11, %v209_v39  ;;  %v212_v46 = vsub.f32 %v829_v8, %v208_v43  ;;  %v210_v48 = vsub.f32 %v833_v11, %v208_v43 }
  0x27   : > { %v238_v18 = vand.u32 2147483647, %v234_v14  ;;  %v239_v19 = vand.u32 2147483647, %v235_v15  ;;  %v236_v20 = vand.u32 2147483647, %v232_v16 }
  0x28   : > { %v237_v21 = vand.u32 2147483647, %v233_v17  ;;  %v217_v44 = vand.u32 2147483647, %v213_v41  ;;  %v215_v45 = vand.u32 2147483647, %v211_v42 }
  0x29   : > { %v242_v22 = vsub.f32 1.0, %v238_v18  ;;  %v243_v23 = vsub.f32 1.0, %v239_v19  ;;  %v240_v24 = vsub.f32 1.0, %v236_v20  ;;  %v216_v52 = vand.u32 2147483647, %v212_v46 }
  0x2a   : > { %v241_v25 = vsub.f32 1.0, %v237_v21  ;;  %v221_v50 = vsub.f32 1.0, %v217_v44  ;;  %v219_v51 = vsub.f32 1.0, %v215_v45  ;;  %v214_v53 = vand.u32 2147483647, %v210_v48 }
  0x2b   : > { %v246_v26 = vmax.f32 %v242_v22, 0.0  ;;  %v247_v27 = vmax.f32 %v243_v23, 0.0  ;;  %v244_v28 = vmax.f32 %v240_v24, 0.0  ;;  %v220_v58 = vsub.f32 1.0, %v216_v52 }
  0x2c   : > { %v245_v29 = vmax.f32 %v241_v25, 0.0  ;;  %v225_v55 = vmax.f32 %v221_v50, 0.0  ;;  %v223_v56 = vmax.f32 %v219_v51, 0.0  ;;  %v218_v60 = vsub.f32 1.0, %v214_v53 }
  0x2d   : > { %295 = vmatpush.msra.mxu0 %v246_v26  ;;  %610 = vmatpush.msra.mxu2 %v246_v26  ;;  %v224_v0 = vmax.f32 %v220_v58, 0.0 }
  0x2e   : > { %336 = vmatpush.msra.mxu1 %v247_v27  ;;  %612 = vmatpush.msra.mxu3 %v247_v27  ;;  %v222_v1 = vmax.f32 %v218_v60, 0.0 }
  0x2f   : > { %296 = vmatpush.msra.mxu0 %v244_v28  ;;  %611 = vmatpush.msra.mxu2 %v244_v28 }
  0x30   : > { %337 = vmatpush.msra.mxu1 %v245_v29  ;;  %613 = vmatpush.msra.mxu3 %v245_v29 }
  0x31   : > { %586 = vmatmul.msk.f32.vlgmr.msra.gmra.mxu0 %vm256_vm0, %v248_v30  ;;  %590 = vmatmul.msk.f32.vlgmr.msra.gmra.mxu2 %vm256_vm0, %v252_v31 }
  0x32   : > { %594 = vmatmul.msk.f32.vlgmr.msra.gmra.mxu1 %vm256_vm0, %v248_v30  ;;  %598 = vmatmul.msk.f32.vlgmr.msra.gmra.mxu3 %vm256_vm0, %v252_v31 }
  0x39   : > { %587 = vmatmul.msk.f32.gmra.mxu0 %vm256_vm0, %v249_v32  ;;  %591 = vmatmul.msk.f32.gmra.mxu2 %vm256_vm0, %v253_v33 }
  0x3a   : > { %595 = vmatmul.msk.f32.gmra.mxu1 %vm256_vm0, %v249_v32  ;;  %599 = vmatmul.msk.f32.gmra.mxu3 %vm256_vm0, %v253_v33 }
  0x41   : > { %588 = vmatmul.msk.f32.gmra.mxu0 %vm256_vm0, %v250_v34  ;;  %592 = vmatmul.msk.f32.gmra.mxu2 %vm256_vm0, %v254_v35 }
  0x42   : > { %596 = vmatmul.msk.f32.gmra.mxu1 %vm256_vm0, %v250_v34  ;;  %600 = vmatmul.msk.f32.gmra.mxu3 %vm256_vm0, %v254_v35 }
  0x49   : > { %589 = vmatmul.msk.f32.gmra.mxu0 %vm256_vm0, %v251_v36  ;;  %593 = vmatmul.msk.f32.gmra.mxu2 %vm256_vm0, %v255_v37 }
  0x4a   : > { %597 = vmatmul.msk.f32.gmra.mxu1 %vm256_vm0, %v251_v36  ;;  %601 = vmatmul.msk.f32.gmra.mxu3 %vm256_vm0, %v255_v37 }
  0xae   : > { %v298_v47 = vpop.f32.mrf.mxu0 }
  0xaf   : > { %v339_v49 = vpop.f32.mrf.mxu1  ;;  %v363_v11 = vmul.f32 %v298_v47, %v222_v1 }
  0xb0   : > { %v364_v63 = vmul.f32 %v339_v49, %v223_v56 }
  0xb4   : > { %v310_v54 = vpop.f32.mrf.mxu2 }
  0xb5   : > { %v351_v57 = vpop.f32.mrf.mxu3  ;;  %v371_v7 = vmul.f32 %v310_v54, %v222_v1 }
  0xb6   : > { %v301_v59 = vpop.f32.mrf.mxu0  ;;  %v372_v8 = vmul.f32 %v351_v57, %v223_v56 }
  0xb7   : > { %v342_v61 = vpop.f32.mrf.mxu1  ;;  %v365_v4 = vmul.f32 %v301_v59, %v224_v0 }
  0xb8   : > { %v366_v62 = vmul.f32 %v342_v61, %v225_v55 }
  0xb9   : > { %v379_v16 = vadd.f32 %v365_v4, %v363_v11 }
  0xba   : > { %v386_v2 = vadd.f32 %v366_v62, %v364_v63 }
  0xbb   : > { %v380_v22 = vrot.slane %v379_v16, 4 }
  0xbc   : > { %v313_v3 = vpop.f32.mrf.mxu2  ;;  %v387_v12 = vrot.slane %v386_v2, 4 }
  0xbd   : > { %v373_v5 = vmul.f32 %v313_v3, %v224_v0  ;;  %v354_v6 = vpop.f32.mrf.mxu3  ;;  %v381_v33 = vadd.f32 %v380_v22, %v379_v16 }
  0xbe   : > { %v374_v9 = vmul.f32 %v354_v6, %v225_v55  ;;  %v304_v10 = vpop.f32.mrf.mxu0  ;;  %v388_v18 = vadd.f32 %v387_v12, %v386_v2 }
  0xbf   : > { %v345_v13 = vpop.f32.mrf.mxu1  ;;  %v407_v14 = vadd.f32 %v373_v5, %v371_v7  ;;  %v367_v27 = vmul.f32 %v304_v10, %v222_v1  ;;  %v382_v42 = vrot.slane %v381_v33, 2 }
  0xc0   : > { %v414_v15 = vadd.f32 %v374_v9, %v372_v8  ;;  %v389_v26 = vrot.slane %v388_v18, 2  ;;  %v368_v31 = vmul.f32 %v345_v13, %v223_v56 }
  0xc1   : > { %v408_v19 = vrot.slane %v407_v14, 4  ;;  %v383_v59 = vadd.f32 %v382_v42, %v381_v33 }
  0xc2   : > { %v415_v17 = vrot.slane %v414_v15, 4  ;;  %v390_v37 = vadd.f32 %v389_v26, %v388_v18 }
  0xc3   : > { %v409_v30 = vadd.f32 %v408_v19, %v407_v14 }
  0xc4   : > { %v416_v20 = vadd.f32 %v415_v17, %v414_v15  ;;  %v316_v21 = vpop.f32.mrf.mxu2  ;;  %v391_v51 = vrot.slane %v390_v37, 1 }
  0xc5   : > { %v357_v23 = vpop.f32.mrf.mxu3  ;;  %v410_v39 = vrot.slane %v409_v30, 2  ;;  %v375_v43 = vmul.f32 %v316_v21, %v222_v1 }
  0xc6   : > { %v417_v24 = vrot.slane %v416_v20, 2  ;;  %v307_v25 = vpop.f32.mrf.mxu0  ;;  %v376_v48 = vmul.f32 %v357_v23, %v223_v56  ;;  %v392_v2 = vadd.f32 %v391_v51, %v390_v37 }
  0xc7   : > { %v369_v28 = vmul.f32 %v307_v25, %v224_v0  ;;  %v348_v29 = vpop.f32.mrf.mxu1  ;;  %v411_v54 = vadd.f32 %v410_v39, %v409_v30 }
  0xc8   : > { %v370_v32 = vmul.f32 %v348_v29, %v225_v55  ;;  %v418_v35 = vadd.f32 %v417_v24, %v416_v20  ;;  %v443_v10 = vrot.slane %v392_v2, 4 }
  0xc9   : > { %v393_v34 = vadd.f32 %v369_v28, %v367_v27  ;;  %v412_v3 = vrot.slane %v411_v54, 1 }
  0xca   : > { %v400_v36 = vadd.f32 %v370_v32, %v368_v31  ;;  %v419_v47 = vrot.slane %v418_v35, 1 }
  0xcb   : > { %v394_v38 = vrot.slane %v393_v34, 4  ;;  %v413_v12 = vadd.f32 %v412_v3, %v411_v54 }
  0xcc   : > { %v401_v40 = vrot.slane %v400_v36, 4  ;;  %v319_v41 = vpop.f32.mrf.mxu2  ;;  %v420_v62 = vadd.f32 %v419_v47, %v418_v35 }
  0xcd   : > { %v395_v44 = vadd.f32 %v394_v38, %v393_v34  ;;  %v377_v45 = vmul.f32 %v319_v41, %v224_v0  ;;  %v360_v46 = vpop.f32.mrf.mxu3 }
  0xce   : > { %v402_v49 = vadd.f32 %v401_v40, %v400_v36  ;;  %v378_v50 = vmul.f32 %v360_v46, %v225_v55  ;;  %v384_v55 = vrot.slane %v383_v59, 1  ;;  %v445_v7 = vrot.slane %v420_v62, 4 }
  0xcf   : > { %v396_v52 = vrot.slane %v395_v44, 2  ;;  %v421_v53 = vadd.f32 %v377_v45, %v375_v43 }
  0xd0   : > { %v403_v57 = vrot.slane %v402_v49, 2  ;;  %v428_v58 = vadd.f32 %v378_v50, %v376_v48  ;;  %v385_v16 = vadd.f32 %v384_v55, %v383_v59  ;;  %v450_v20 = vsel %vm447_vm1, %v413_v12, %v445_v7 }
  0xd1   : > { %v397_v60 = vadd.f32 %v396_v52, %v395_v44  ;;  %v422_v61 = vrot.slane %v421_v53, 4  ;;  %v457_v25 = vrot.slane %v450_v20, 6 }
  0xd2   : > { %v404_v63 = vadd.f32 %v403_v57, %v402_v49  ;;  %v429_v1 = vrot.slane %v428_v58, 4  ;;  %v448_v23 = vsel %vm447_vm1, %v385_v16, %v443_v10 }
  0xd3   : > { %v423_v0 = vadd.f32 %v422_v61, %v421_v53  ;;  %v398_v4 = vrot.slane %v397_v60, 1 }
  0xd4   : > { %v405_v56 = vrot.slane %v404_v63, 1  ;;  %v430_v5 = vadd.f32 %v429_v1, %v428_v58 }
  0xd5   : > { %v424_v6 = vrot.slane %v423_v0, 2  ;;  %v399_v13 = vadd.f32 %v398_v4, %v397_v60 }
  0xd6   : > { %v406_v8 = vadd.f32 %v405_v56, %v404_v63  ;;  %v431_v9 = vrot.slane %v430_v5, 2 }
  0xd7   : > { %v425_v11 = vadd.f32 %v424_v6, %v423_v0 }
  0xd8   : > { %v444_v14 = vrot.slane %v406_v8, 4  ;;  %v432_v15 = vadd.f32 %v431_v9, %v430_v5 }
  0xd9   : > { %v426_v17 = vrot.slane %v425_v11, 1 }
  0xda   : > { %v433_v18 = vrot.slane %v432_v15, 1  ;;  %v449_v19 = vsel %vm447_vm1, %v399_v13, %v444_v14 }
  0xdb   : > { %v452_v21 = vrot.slane %v449_v19, 7  ;;  %v427_v26 = vadd.f32 %v426_v17, %v425_v11 }
  0xdc   : > { %v434_v22 = vadd.f32 %v433_v18, %v432_v15 }
  0xdd   : > { %v454_v24 = vsel %vm453_vm2, %v452_v21, %v448_v23 }
  0xde   : > { %v446_v27 = vrot.slane %v434_v22, 4  ;;  %v456_v28 = vsel %vm455_vm3, %v452_v21, %v454_v24 }
  0xdf   : > { %v459_v29 = vsel %vm458_vm4, %v457_v25, %v456_v28 }
  0xe0   : > { %v451_v30 = vsel %vm447_vm1, %v427_v26, %v446_v27  ;;  %v461_v32 = vsel %vm460_vm5, %v457_v25, %v459_v29 }
  0xe1   : > { %v462_v31 = vrot.slane %v451_v30, 5 }
  0xe3   : > { %v464_v33 = vsel %vm463_vm6, %v462_v31, %v461_v32 }
  0xe4   : > { %v466_v34 = vsel %vm465_vm7, %v462_v31, %v464_v33 }
  0xe5   : > { %468 = vst [vmem:[%s176_s12] sm:$0xff] %v466_v34 }
  0xe6   : > { %696 = shalt.err (!%p693_p5)
}
  0xe7   : > { %614 = dma.vmem_to_hbm [thread:$0]  (%p804_p4), %s486_s16, 128, %s488_s18, %s470_s20  }
  0xe8 PF: > { %p620_p6 = scmp.ge.s32.totalorder %s747_s14, 2  ;;  %s499_s30 = sand.u32 1, %s727_s9  }
  0xe9   : > { %s500_s3 = scalar_lea.sflag [#allocation3], %s499_s30 }
  0xea   : > { %p617_p7 = pnand %p620_p6, %p811_p8 }
  0xec   : > { %p618_p9 = pneg %p617_p7 }
  0xee   : > { %722 = dma.done.wait (%p618_p9), %s500_s3, 128  }
  0xef   : > { %724 = vsyncadd (%p618_p9), %s500_s3, 4294967168  ;;  %s15_s14 = sadd.s32 1, %s747_s14   ;;  %s918_s9 = smov %s731_s10 }
  0xf0   : > { %p12_p10 = scmp.ge.s32.totalorder %s15_s14, 4   ;;  %s919_s10 = smov %s735_s11 }
  0xf1   : > { %s920_s11 = smov %s817_s22  ;;  %s921_s12 = smov %s743_s13 }
  0xf2   : > { %s922_s13 = smov %s924_s17  ;;  %14 = sbr.rel (!%p12_p10) target bundleno = 4 (0x4), region = 66 }
  0xf7   :  { %506 = vsyncpa [#allocation3], 1 }
  0xf8   :  { %508 = vsyncpa [#allocation3 + $0x1], 1 }

</bundles_post_ra>
